<compile_context>
chip_gen: v6e
topology: v6e:2x2x1
jax: 0.10.0
libtpu: 0.0.40
codegen_flags: <defaults>
</compile_context>

<pallas_src>
import jax
import jax.numpy as jnp
from jax.experimental import pallas as pl
from jax.experimental.pallas import tpu as pltpu


def _ann_kernel(params_ref, x_ref, o_ref):
    # params_ref (SMEM, f32[5]): [w1_00, w1_01, b1, w2, b2]
    # x_ref      (VMEM): (2, TILE)  -- feature axis on sublanes, batch on lanes
    # o_ref      (VMEM): (1, TILE)  -- lane-dense output row
    w00 = params_ref[0]
    w01 = params_ref[1]
    b1 = params_ref[2]
    w2 = params_ref[3]
    b2 = params_ref[4]

    x = x_ref[...]                      # (2, TILE)
    x0 = x[0:1, :]                      # (1, TILE)
    x1 = x[1:2, :]                      # (1, TILE)

    # Linear(2, 1): pure VPU multiply-add across dense lanes.
    h = w00 * x0 + w01 * x1 + b1        # (1, TILE)
    # ReLU
    h = jnp.maximum(h, 0.0)
    # Linear(1, 1)
    y = h * w2 + b2                     # (1, TILE)
    # Sigmoid (EUP)
    o_ref[...] = jax.nn.sigmoid(y)


def ann_forward(x, w1, b1, w2, b2, *, tile=512):
    """Pallas forward pass for theClass4ANN.

    x:  (N, 2) float32
    w1: (1, 2) float32, b1: (1,) float32
    w2: (1, 1) float32, b2: (1,) float32
    returns (N, 1) float32
    """
    n = x.shape[0]
    n_pad = tile * pl.cdiv(n, tile)

    # Repack x to (2, N_pad): feature axis -> sublanes, batch -> lanes.
    x_t = jnp.zeros((2, n_pad), jnp.float32)
    x_t = x_t.at[:, :n].set(x.astype(jnp.float32).T)

    # All parameters packed as 5 scalars for SMEM.
    params = jnp.concatenate([
        w1.reshape(-1), b1.reshape(-1), w2.reshape(-1), b2.reshape(-1)
    ]).astype(jnp.float32)                                  # (5,)

    grid = (n_pad // tile,)
    out = pl.pallas_call(
        _ann_kernel,
        out_shape=jax.ShapeDtypeStruct((1, n_pad), jnp.float32),
        grid=grid,
        in_specs=[
            pl.BlockSpec(memory_space=pltpu.MemorySpace.SMEM),       # params
            pl.BlockSpec((2, tile), lambda i: (0, i)),               # x tile
        ],
        out_specs=pl.BlockSpec((1, tile), lambda i: (0, i)),         # out tile
        compiler_params=pltpu.CompilerParams(
            dimension_semantics=("parallel",)),
    )(params, x_t)                                          # (1, n_pad)

    return out[0, :n].reshape(n, 1)


def ann_reference(x, w1, b1, w2, b2):
    h = jnp.maximum(x @ w1.T + b1, 0.0)
    y = h @ w2.T + b2
    return jax.nn.sigmoid(y)


if __name__ == "__main__":
    key = jax.random.PRNGKey(0)
    k_x, k_w1, k_b1, k_w2, k_b2 = jax.random.split(key, 5)

    batch = 8
    x = jax.random.normal(k_x, (batch, 2), dtype=jnp.float32)

    # Deterministic parameter init (shapes from nn.Linear(2,1) and nn.Linear(1,1)).
    w1 = jax.random.uniform(k_w1, (1, 2), jnp.float32, -0.5, 0.5)
    b1 = jax.random.uniform(k_b1, (1,), jnp.float32, -0.5, 0.5)
    w2 = jax.random.uniform(k_w2, (1, 1), jnp.float32, -0.5, 0.5)
    b2 = jax.random.uniform(k_b2, (1,), jnp.float32, -0.5, 0.5)

    out = ann_forward(x, w1, b1, w2, b2)
    out = jax.block_until_ready(out)

    ref = ann_reference(x, w1, b1, w2, b2)
    assert out.shape == (batch, 1)
    assert jnp.allclose(out, ref, atol=1e-5, rtol=1e-5)

    print("KERNEL_OK")
</pallas_src>

<mosaic_0001>
module attributes {stable_mosaic.version = 11 : i64} {
  func.func @_ann_kernel(%arg0: i32, %arg1: memref<5xf32, #tpu.memory_space<smem>>, %arg2: memref<2x512xf32, #tpu.memory_space<vmem>>, %arg3: memref<1x512xf32, #tpu.memory_space<vmem>>) attributes {dimension_semantics = [#tpu.dimension_semantics<parallel>], iteration_bounds = array<i64: 1>, scalar_prefetch = 0 : i64, scratch_operands = 0 : i64, tpu.core_type = #tpu.core_type<tc>, window_params = [{transform_indices = @transform_0, window_bounds = array<i64: 5>}, {transform_indices = @transform_1, window_bounds = array<i64: 2, 512>}, {transform_indices = @transform_2, window_bounds = array<i64: 1, 512>}]} {
    %c0 = arith.constant 0 : index
    %0 = memref.load %arg1[%c0] : memref<5xf32, #tpu.memory_space<smem>>
    %c1 = arith.constant 1 : index
    %1 = memref.load %arg1[%c1] : memref<5xf32, #tpu.memory_space<smem>>
    %c2 = arith.constant 2 : index
    %2 = memref.load %arg1[%c2] : memref<5xf32, #tpu.memory_space<smem>>
    %c3 = arith.constant 3 : index
    %3 = memref.load %arg1[%c3] : memref<5xf32, #tpu.memory_space<smem>>
    %c4 = arith.constant 4 : index
    %4 = memref.load %arg1[%c4] : memref<5xf32, #tpu.memory_space<smem>>
    %c0_0 = arith.constant 0 : index
    %c0_1 = arith.constant 0 : index
    %5 = vector.load %arg2[%c0_0, %c0_1] : memref<2x512xf32, #tpu.memory_space<vmem>>, vector<2x512xf32>
    %6 = vector.extract_strided_slice %5 {offsets = [0, 0], sizes = [1, 512], strides = [1, 1]} : vector<2x512xf32> to vector<1x512xf32>
    %7 = vector.extract_strided_slice %5 {offsets = [1, 0], sizes = [1, 512], strides = [1, 1]} : vector<2x512xf32> to vector<1x512xf32>
    %8 = vector.broadcast %0 : f32 to vector<1x512xf32>
    %9 = arith.mulf %8, %6 : vector<1x512xf32>
    %10 = vector.broadcast %1 : f32 to vector<1x512xf32>
    %11 = arith.mulf %10, %7 : vector<1x512xf32>
    %12 = arith.addf %9, %11 : vector<1x512xf32>
    %13 = vector.broadcast %2 : f32 to vector<1x512xf32>
    %14 = arith.addf %12, %13 : vector<1x512xf32>
    %cst = arith.constant 0.000000e+00 : f32
    %15 = vector.broadcast %cst : f32 to vector<1x512xf32>
    %16 = arith.maximumf %14, %15 : vector<1x512xf32>
    %17 = vector.broadcast %3 : f32 to vector<1x512xf32>
    %18 = arith.mulf %16, %17 : vector<1x512xf32>
    %19 = vector.broadcast %4 : f32 to vector<1x512xf32>
    %20 = arith.addf %18, %19 : vector<1x512xf32>
    %21 = arith.negf %20 : vector<1x512xf32>
    %22 = math.exp %21 : vector<1x512xf32>
    %cst_2 = arith.constant 1.000000e+00 : f32
    %23 = vector.broadcast %cst_2 : f32 to vector<1x512xf32>
    %24 = arith.addf %23, %22 : vector<1x512xf32>
    %25 = arith.divf %23, %24 : vector<1x512xf32>
    %c0_3 = arith.constant 0 : index
    %c0_4 = arith.constant 0 : index
    %26 = vector.load %arg3[%c0_3, %c0_4] : memref<1x512xf32, #tpu.memory_space<vmem>>, vector<1x512xf32>
    tpu.vector_store %arg3[%c0_3, %c0_4], %25 {strides = array<i32>} : memref<1x512xf32, #tpu.memory_space<vmem>>, vector<1x512xf32>,
    return
  }
  func.func @transform_0(%arg0: i32) -> i32 {
    %c0_i32 = arith.constant 0 : i32
    %c0_i32_0 = arith.constant 0 : i32
    return %c0_i32 : i32
  }
  func.func @transform_1(%arg0: i32) -> (i32, i32) {
    %c0_i32 = arith.constant 0 : i32
    %c0_i32_0 = arith.constant 0 : i32
    return %c0_i32, %arg0 : i32, i32
  }
  func.func @transform_2(%arg0: i32) -> (i32, i32) {
    %c0_i32 = arith.constant 0 : i32
    %c0_i32_0 = arith.constant 0 : i32
    return %c0_i32, %arg0 : i32, i32
  }
}

</mosaic_0001>

<bundles_post_ra>
// kernel: tpu_custom_call.1
= control target key start
LH: loop header
LB: loop body
LE: loop exit
PB: predicated region body
PF: predicated region fallthrough
CT: control target
= control target key end

     0   :  { %7 = vsyncpa [#allocation5], 0  ;;  %s189_s0 = inlined_call_operand.hbm [shape: f32[5], index: 0, kind: input, shape index: {}]   ;;  %s190_s1 = inlined_call_operand.hbm [shape: f32[2,512], index: 1, kind: input, shape index: {}]   ;;  %s191_s2 = inlined_call_operand.hbm [shape: f32[1,512], index: 2, kind: output, shape index: {}]  }
   0x1   :  { %8 = vsyncpa [#allocation3], 0 }
   0x2   :  { %9 = vsyncpa [#allocation4], 0  ;;  %s161_s9 = smov [#allocation2]   ;;  %s162_s12 = smov [#allocation6]  }
   0x3   :  { %17 = dma.hbm_to_smem %s189_s0, 16, %s161_s9, [#allocation5]  }
   0x4   :  { %s24_s13 = sshll.u32 %s162_s12, 4  ;;  %s25_s13 = int_to_ptr.vmem [resolvable:$true] %s24_s13 }
   0x5   :  { %s123_s14 = scalar_lea.vmem %s25_s13, 128  ;;  %p128_p1 = scmp.lt.s32.totalorder %s25_s13, %s25_s13 }
   0x6   :  { %p124_p0 = scmp.ne.s32.totalorder %s25_s13, %s123_s14  ;;  %p129_p2 = scmp.lt.s32.totalorder %s123_s14, %s123_s14 }
   0x8   :  { %p130_p3 = por %p129_p2, %p128_p1 }
   0xa   :  { %p131_p4 = pnand %p130_p3, %p124_p0 }
   0xc   :  { %134 = shalt.err (!%p131_p4)
}
   0xd   :  { %27 = dma.hbm_to_vmem [thread:$0]  %s190_s1, 128, %s25_s13, [#allocation3]  }
   0xe   :  { %155 = dma.done.wait [#allocation5], 16  }
   0xf   :  { %156 = vsyncadd [#allocation5], 4294967280 }
  0x10   :  { %157 = dma.done.wait [#allocation3], 128  }
  0x11   :  { %158 = vsyncadd [#allocation3], 4294967168 }
  0x12   :  { %34 = sfence }
  0x13   :  { %s35_s0 = sld [smem:[#allocation2]]  ;;  %v40_v0 = vld [vmem:[#allocation6] sm:$0xff]  ;;  %v163_v17 = vmov 1966171168   ;;  %v67_v19 = vlaneseq  ;;  %s164_s1 = smov [#allocation7]  }
  0x14   :  { %s93_s17 = sld [smem:[#allocation2 + $0x1]]  ;;  %v65_v18 = vunpack.c.l.s4 %v163_v17  ;;  %s83_s21 = sshll.u32 %s164_s1, 4  ;;  %s84_s21 = int_to_ptr.vmem [resolvable:$true] %s83_s21 }
  0x15   :  { %s94_s18 = sld [smem:[#allocation2 + $0x2]]  ;;  %v68_v21 = vshrl.u32 %v67_v19, 7  ;;  %vm74_vm0 = vcmp.lt.s32.totalorder %v67_v19, 512  ;;  %s135_s22 = scalar_lea.vmem %s84_s21, 64 }
  0x16   :  { %s95_s19 = sld [smem:[#allocation2 + $0x3]]  ;;  %v66_v20 = vunpack.c.0.s8 %v65_v18  ;;  %p136_p5 = scmp.ne.s32.totalorder %s84_s21, %s135_s22 }
  0x17   :  { %s96_s20 = sld [smem:[#allocation2 + $0x4]]  ;;  %p140_p6 = scmp.lt.s32.totalorder %s84_s21, %s84_s21 }
  0x18   :  { %v69_v22 = vsub.s32 %v66_v20, %v68_v21  ;;  %p141_p7 = scmp.lt.s32.totalorder %s135_s22, %s135_s22 }
  0x19   :  { %v41_v1 = vstv %s35_s0 }
  0x1a   :  { %v43_v2 = vstv %s93_s17  ;;  %v42_v3 = vmul.f32 %v41_v1, %v40_v0  ;;  %p142_p8 = por %p141_p7, %p140_p6 }
  0x1b   :  { %v44_v4 = vmul.f32 %v43_v2, %v40_v0  ;;  %v50_v6 = vstv %s94_s18 }
  0x1c   :  { %v53_v9 = vstv %s95_s19  ;;  %p143_p9 = pnand %p142_p8, %p136_p5 }
  0x1d   :  { %v97_v5 = vrot.slane %v44_v4, 9  ;;  %v55_v11 = vstv %s96_s20 }
  0x1f   :  { %v49_v7 = vadd.f32 %v97_v5, %v42_v3 }
  0x21   :  { %v51_v8 = vadd.f32 %v50_v6, %v49_v7 }
  0x23   :  { %v52_v10 = vmax.f32 %v51_v8, 0.0 }
  0x25   :  { %v54_v12 = vmul.f32 %v53_v9, %v52_v10 }
  0x27   :  { %v56_v13 = vadd.f32 %v55_v11, %v54_v12 }
  0x29   :  { %v98_v14 = vmul.f32 -1.442695, %v56_v13 }
  0x2b   :  { %103 = vpow2.f32 %v98_v14 }
  0x38   :  { %v104_v15 = vpop.eup %103 }
  0x39   :  { %v60_v16 = vadd.f32 1.0, %v104_v15 }
  0x3b   :  { %105 = vrcp.f32 %v60_v16 }
  0x48   :  { %v106_v23 = vpop.eup %105 }
  0x49   :  { %v70_v24 = vrot.slane %v106_v23, %v69_v22 }
  0x4b   :  { %76 = vst.msk [vmem:[#allocation7] sm:$0xf] %vm74_vm0, %v70_v24 }
  0x4c   :  { %146 = shalt.err (!%p143_p9)
}
  0x4d   :  { %86 = dma.vmem_to_hbm [thread:$0]  %s84_s21, 64, %s191_s2, [#allocation4]  }
  0x4e   :  { %159 = dma.done.wait [#allocation4], 64  }
  0x4f   :  { %160 = vsyncadd [#allocation4], 4294967232 }
  0x50   :  { %90 = vsyncpa [#allocation3], 1 }
  0x51   :  { %91 = vsyncpa [#allocation4], 1 }
  0x52   :  { %92 = vsyncpa [#allocation5], 1 }

</bundles_post_ra>
